<compile_context>
chip_gen: v5e
topology: v5e:2x2
jax: 0.10.0
libtpu: 0.0.40
codegen_flags: <defaults>
</compile_context>

<pallas_src>
import jax
import jax.numpy as jnp
from jax.experimental import pallas as pl
from jax.experimental.pallas import tpu as pltpu


# ----------------------------- Pallas kernels ------------------------------ #

def _bmm(a, b):
    """Per-batch matmul over leading dim 0 with f32 accumulation on the MXU."""
    return jax.lax.dot_general(
        a, b, (((2,), (1,)), ((0,), (0,))), preferred_element_type=jnp.float32)


def _translate_pair_kernel(x_ref, z_ref, wy_ref, wxT_ref, out_ref, out2_ref):
    """Fused: warp `x` (denorm -> warp -> round -> norm) and plain-warp `z`."""
    G, C, H, W = x_ref.shape
    wy255 = wy_ref[...].astype(jnp.float32)     # (G, H, H), pre-scaled by 255 on host
    wxT = wxT_ref[...].astype(jnp.float32)      # (G, W, W), [src_w, dst_k]

    # W-contraction: merge (C, H) so each batch is one (C*H, W) @ (W, W) matmul
    # (big M instead of M=C; no transposes -- contraction sits on the lane dim).
    x = x_ref[...].astype(jnp.float32).reshape(G, C * H, W)
    z = z_ref[...].astype(jnp.float32).reshape(G, C * H, W)
    t_x = _bmm(x, wxT)                          # (G, C*H, W)
    t_z = _bmm(z, wxT)                          # (G, C*H, W)

    inv255 = 1.0 / 255.0
    # H-contraction channel-by-channel (C is small and static): per batch a
    # plain (H, H) @ (H, W) matmul; the (G, H, W) result maps directly onto the
    # NCHW output block, so no in-kernel transposes are needed anywhere.
    for c in range(C):
        yx = _bmm(wy255, t_x[:, c * H:(c + 1) * H, :])          # (G, H, W)
        out_ref[:, c, :, :] = (jnp.round(yx) * inv255).astype(out_ref.dtype)
        # z path shares the *255-folded Wy; the trailing *(1/255) undoes it
        # (differs from the unscaled warp by a few f32 ulps only).
        yz = _bmm(wy255, t_z[:, c * H:(c + 1) * H, :])           # (G, H, W)
        out2_ref[:, c, :, :] = (yz * inv255).astype(out2_ref.dtype)


def _translate_single_kernel(x_ref, wy_ref, wxT_ref, out_ref):
    G, C, H, W = x_ref.shape
    wy255 = wy_ref[...].astype(jnp.float32)
    wxT = wxT_ref[...].astype(jnp.float32)
    x = x_ref[...].astype(jnp.float32).reshape(G, C * H, W)
    t = _bmm(x, wxT)                            # (G, C*H, W)
    inv255 = 1.0 / 255.0
    for c in range(C):
        y = _bmm(wy255, t[:, c * H:(c + 1) * H, :])              # (G, H, W)
        out_ref[:, c, :, :] = (jnp.round(y) * inv255).astype(out_ref.dtype)


# --------------------------- pallas_call builders --------------------------- #

def _vmem_budget_bytes():
    """~80% of this generation's VMEM (128 MiB v5e/v6e, 64 MiB per-TC v7x)."""
    try:
        info = pltpu.get_tpu_info()
        cap = int(getattr(info, "vmem_capacity_bytes", 64 * 1024 * 1024))
    except Exception:
        cap = 64 * 1024 * 1024                  # conservative fallback (v7x per-TC)
    return max(int(cap * 0.8), 8 * 1024 * 1024)


def _choose_group(B, per_batch_step_bytes, vmem_budget):
    """Largest divisor of B such that (a) at least min(4, B) grid steps remain
    (>= 2 steps per v7x TensorCore so prefetch overlaps compute) and (b) the
    double-buffered in/out blocks stay well inside the VMEM budget."""
    best = 1
    for g in range(1, B + 1):
        if B % g:
            continue
        if B // g < min(4, B):
            continue
        if 4 * g * per_batch_step_bytes > vmem_budget:
            continue
        best = g
    return best


def _compiler_params(step_bytes, vmem_budget):
    want = max(32 * 1024 * 1024, 6 * step_bytes)
    return pltpu.CompilerParams(
        dimension_semantics=("parallel",),      # batch-group axis shards across TCs
        vmem_limit_bytes=max(min(want, vmem_budget), 4 * 1024 * 1024),
    )


def _warp_pair(x, z, wy255, wxT):
    B, C, H, W = x.shape
    itemsize = x.dtype.itemsize
    vmem_budget = _vmem_budget_bytes()
    per_batch = 4 * C * H * W * itemsize + (H * H + W * W) * 4
    G = _choose_group(B, per_batch, vmem_budget)

    img_spec = pl.BlockSpec((G, C, H, W), lambda b: (b, 0, 0, 0))
    wy_spec = pl.BlockSpec((G, H, H), lambda b: (b, 0, 0))
    wx_spec = pl.BlockSpec((G, W, W), lambda b: (b, 0, 0))

    cost = pl.CostEstimate(
        flops=2 * B * (2 * C) * H * W * (H + W),
        transcendentals=0,
        bytes_accessed=B * per_batch,
    )
    return pl.pallas_call(
        _translate_pair_kernel,
        out_shape=(jax.ShapeDtypeStruct(x.shape, x.dtype),
                   jax.ShapeDtypeStruct(z.shape, z.dtype)),
        grid=(B // G,),
        in_specs=[img_spec, img_spec, wy_spec, wx_spec],
        out_specs=(img_spec, img_spec),
        compiler_params=_compiler_params(G * per_batch, vmem_budget),
        cost_estimate=cost,
    )(x, z, wy255, wxT)


def _warp_single(x, wy255, wxT):
    B, C, H, W = x.shape
    itemsize = x.dtype.itemsize
    vmem_budget = _vmem_budget_bytes()
    per_batch = 2 * C * H * W * itemsize + (H * H + W * W) * 4
    G = _choose_group(B, per_batch, vmem_budget)

    img_spec = pl.BlockSpec((G, C, H, W), lambda b: (b, 0, 0, 0))
    wy_spec = pl.BlockSpec((G, H, H), lambda b: (b, 0, 0))
    wx_spec = pl.BlockSpec((G, W, W), lambda b: (b, 0, 0))

    cost = pl.CostEstimate(
        flops=2 * B * C * H * W * (H + W),
        transcendentals=0,
        bytes_accessed=B * per_batch,
    )
    return pl.pallas_call(
        _translate_single_kernel,
        out_shape=jax.ShapeDtypeStruct(x.shape, x.dtype),
        grid=(B // G,),
        in_specs=[img_spec, wy_spec, wx_spec],
        out_specs=img_spec,
        compiler_params=_compiler_params(G * per_batch, vmem_budget),
        cost_estimate=cost,
    )(x, wy255, wxT)


# ------------------------------ JAX glue ----------------------------------- #

def _translation_matrix(size, shift):
    """(B, size, size) matrix M with (M @ v)[i] = bilinear sample of v at i - shift[b].

    Zero padding for out-of-range source coordinates (warp_affine default),
    align_corners=True pixel mapping (the pixel-space shift is used directly).
    """
    shift = shift.astype(jnp.float32)
    idx = jnp.arange(size, dtype=jnp.float32)
    src = idx[None, :] - shift[:, None]                  # (B, size) source coords
    j0f = jnp.floor(src)
    w1 = src - j0f
    w0 = 1.0 - w1
    j0 = j0f.astype(jnp.int32)
    j1 = j0 + 1
    in0 = ((j0 >= 0) & (j0 <= size - 1)).astype(jnp.float32)
    in1 = ((j1 >= 0) & (j1 <= size - 1)).astype(jnp.float32)
    oh0 = jax.nn.one_hot(jnp.clip(j0, 0, size - 1), size, dtype=jnp.float32)
    oh1 = jax.nn.one_hot(jnp.clip(j1, 0, size - 1), size, dtype=jnp.float32)
    return (w0 * in0)[..., None] * oh0 + (w1 * in1)[..., None] * oh1


def generate_translate_params(key, shape, max_frac=(0.2, 0.2)):
    """Per-batch (ty, tx) pixel shifts, RandomAffine(translate=(0.2, 0.2)) style."""
    # TODO(synk): exact RNG parity with kornia/torch generate_parameters is not
    # reproducible in JAX; the same U(-0.2*dim, 0.2*dim) distribution is used.
    B, _, H, W = shape
    kx, ky = jax.random.split(key)
    tx = jax.random.uniform(kx, (B,), minval=-max_frac[0] * W, maxval=max_frac[0] * W)
    ty = jax.random.uniform(ky, (B,), minval=-max_frac[1] * H, maxval=max_frac[1] * H)
    return ty, tx


def translate_forward(x, ty, tx, other=None):
    """Pallas equivalent of Translate.forward given sampled per-batch (ty, tx)."""
    B, C, H, W = x.shape
    # Host-side weight build; the *255 denormalize is folded into the tiny
    # (H, H) Wy matrix here instead of per grid step inside the kernel.
    wy255 = _translation_matrix(H, ty) * 255.0              # (B, H, H)
    wxT = _translation_matrix(W, tx).transpose(0, 2, 1)     # (B, W, W): [src_w, dst_k]
    if other is None:
        return _warp_single(x, wy255, wxT)
    return _warp_pair(x, other, wy255, wxT)


# --------------------------- reference (pure JAX) --------------------------- #

def _reference(x, ty, tx, other=None):
    wy = _translation_matrix(x.shape[2], ty)
    wx = _translation_matrix(x.shape[3], tx)
    tmp = jnp.einsum("bij,bcjw->bciw", wy, x * 255.0)
    warped = jnp.einsum("bciw,bkw->bcik", tmp, wx)
    out = jnp.round(warped) / 255.0
    if other is None:
        return out
    tmp_o = jnp.einsum("bij,bcjw->bciw", wy, other)
    other_out = jnp.einsum("bciw,bkw->bcik", tmp_o, wx)
    return out, other_out


# ---------------------------------- main ------------------------------------ #

if __name__ == "__main__":
    key = jax.random.PRNGKey(0)
    k_x, k_other, k_param = jax.random.split(key, 3)

    B, C, H, W = 2, 4, 16, 16
    x = jax.random.uniform(k_x, (B, C, H, W), dtype=jnp.float32)       # in [0, 1]
    other = jax.random.uniform(k_other, (B, C, H, W), dtype=jnp.float32)

    ty, tx = generate_translate_params(k_param, x.shape)

    out, other_out = translate_forward(x, ty, tx, other=other)
    out = jax.block_until_ready(out)
    other_out = jax.block_until_ready(other_out)

    out_single = jax.block_until_ready(translate_forward(x, ty, tx))

    ref_out, ref_other = _reference(x, ty, tx, other=other)

    assert out.shape == (B, C, H, W) and other_out.shape == (B, C, H, W)

    # Rounded path: allow a 1/255 discrepancy on a tiny fraction of pixels
    # (f32 accumulation-order differences near a .5 rounding boundary).
    diff = jnp.abs(out - ref_out)
    assert float(jnp.max(diff)) <= (1.0 / 255.0) + 1e-5, "kernel mismatch vs reference"
    assert float(jnp.mean(diff > 1e-4)) < 0.01, "too many rounding flips vs reference"

    diff_s = jnp.abs(out_single - ref_out)
    assert float(jnp.max(diff_s)) <= (1.0 / 255.0) + 1e-5
    assert float(jnp.mean(diff_s > 1e-4)) < 0.01

    # Un-rounded `other` path: plain numeric tolerance.
    assert float(jnp.max(jnp.abs(other_out - ref_other))) < 1e-4, "other path mismatch"

    print("KERNEL_OK")
</pallas_src>

<mosaic_0001>
module attributes {stable_mosaic.version = 11 : i64} {
  func.func @_translate_pair_kernel(%arg0: i32, %arg1: memref<1x4x16x16xf32, #tpu.memory_space<vmem>>, %arg2: memref<1x4x16x16xf32, #tpu.memory_space<vmem>>, %arg3: memref<1x16x16xf32, #tpu.memory_space<vmem>>, %arg4: memref<1x16x16xf32, #tpu.memory_space<vmem>>, %arg5: memref<1x4x16x16xf32, #tpu.memory_space<vmem>>, %arg6: memref<1x4x16x16xf32, #tpu.memory_space<vmem>>) attributes {dimension_semantics = [#tpu.dimension_semantics<parallel>], iteration_bounds = array<i64: 2>, scalar_prefetch = 0 : i64, scratch_operands = 0 : i64, tpu.core_type = #tpu.core_type<tc>, window_params = [{transform_indices = @transform_0, window_bounds = array<i64: 1, 4, 16, 16>}, {transform_indices = @transform_1, window_bounds = array<i64: 1, 4, 16, 16>}, {transform_indices = @transform_2, window_bounds = array<i64: 1, 16, 16>}, {transform_indices = @transform_3, window_bounds = array<i64: 1, 16, 16>}, {transform_indices = @transform_4, window_bounds = array<i64: 1, 4, 16, 16>}, {transform_indices = @transform_5, window_bounds = array<i64: 1, 4, 16, 16>}]} {
    %c0 = arith.constant 0 : index
    %c0_0 = arith.constant 0 : index
    %c0_1 = arith.constant 0 : index
    %0 = vector.load %arg3[%c0, %c0_0, %c0_1] : memref<1x16x16xf32, #tpu.memory_space<vmem>>, vector<1x16x16xf32>
    %c0_2 = arith.constant 0 : index
    %c0_3 = arith.constant 0 : index
    %c0_4 = arith.constant 0 : index
    %1 = vector.load %arg4[%c0_2, %c0_3, %c0_4] : memref<1x16x16xf32, #tpu.memory_space<vmem>>, vector<1x16x16xf32>
    %c0_5 = arith.constant 0 : index
    %c0_6 = arith.constant 0 : index
    %c0_7 = arith.constant 0 : index
    %c0_8 = arith.constant 0 : index
    %2 = vector.load %arg1[%c0_5, %c0_6, %c0_7, %c0_8] : memref<1x4x16x16xf32, #tpu.memory_space<vmem>>, vector<1x4x16x16xf32>
    %3 = vector.shape_cast %2 : vector<1x4x16x16xf32> to vector<1x64x16xf32>
    %c0_9 = arith.constant 0 : index
    %c0_10 = arith.constant 0 : index
    %c0_11 = arith.constant 0 : index
    %c0_12 = arith.constant 0 : index
    %4 = vector.load %arg2[%c0_9, %c0_10, %c0_11, %c0_12] : memref<1x4x16x16xf32, #tpu.memory_space<vmem>>, vector<1x4x16x16xf32>
    %5 = vector.shape_cast %4 : vector<1x4x16x16xf32> to vector<1x64x16xf32>
    %cst = arith.constant dense<0.000000e+00> : vector<1x64x16xf32>
    %6 = tpu.matmul %3, %1, %cst {dimension_numbers = #tpu.dot_dimension_numbers<[2], [1], [1], [2], [0, 0, 0, 1, 1, 2], [0], [0]>} : vector<1x64x16xf32>, vector<1x16x16xf32>, vector<1x64x16xf32> -> vector<1x64x16xf32>
    %cst_13 = arith.constant dense<0.000000e+00> : vector<1x64x16xf32>
    %7 = tpu.matmul %5, %1, %cst_13 {dimension_numbers = #tpu.dot_dimension_numbers<[2], [1], [1], [2], [0, 0, 0, 1, 1, 2], [0], [0]>} : vector<1x64x16xf32>, vector<1x16x16xf32>, vector<1x64x16xf32> -> vector<1x64x16xf32>
    %8 = vector.extract_strided_slice %6 {offsets = [0, 0, 0], sizes = [1, 16, 16], strides = [1, 1, 1]} : vector<1x64x16xf32> to vector<1x16x16xf32>
    %cst_14 = arith.constant dense<0.000000e+00> : vector<1x16x16xf32>
    %9 = tpu.matmul %0, %8, %cst_14 {dimension_numbers = #tpu.dot_dimension_numbers<[2], [1], [1], [2], [0, 0, 0, 1, 1, 2], [0], [0]>} : vector<1x16x16xf32>, vector<1x16x16xf32>, vector<1x16x16xf32> -> vector<1x16x16xf32>
    %10 = math.roundeven %9 : vector<1x16x16xf32>
    %cst_15 = arith.constant 0.00392156886 : f32
    %11 = vector.broadcast %cst_15 : f32 to vector<1x16x16xf32>
    %12 = arith.mulf %10, %11 : vector<1x16x16xf32>
    %c0_16 = arith.constant 0 : index
    %c0_17 = arith.constant 0 : index
    %c0_18 = arith.constant 0 : index
    %c0_19 = arith.constant 0 : index
    %13 = vector.load %arg5[%c0_16, %c0_17, %c0_18, %c0_19] : memref<1x4x16x16xf32, #tpu.memory_space<vmem>>, vector<1x1x16x16xf32>
    %14 = vector.shape_cast %13 : vector<1x1x16x16xf32> to vector<1x16x16xf32>
    %15 = vector.shape_cast %12 : vector<1x16x16xf32> to vector<1x1x16x16xf32>
    tpu.vector_store %arg5[%c0_16, %c0_17, %c0_18, %c0_19], %15 {strides = array<i32>} : memref<1x4x16x16xf32, #tpu.memory_space<vmem>>, vector<1x1x16x16xf32>,
    %16 = vector.extract_strided_slice %7 {offsets = [0, 0, 0], sizes = [1, 16, 16], strides = [1, 1, 1]} : vector<1x64x16xf32> to vector<1x16x16xf32>
    %cst_20 = arith.constant dense<0.000000e+00> : vector<1x16x16xf32>
    %17 = tpu.matmul %0, %16, %cst_20 {dimension_numbers = #tpu.dot_dimension_numbers<[2], [1], [1], [2], [0, 0, 0, 1, 1, 2], [0], [0]>} : vector<1x16x16xf32>, vector<1x16x16xf32>, vector<1x16x16xf32> -> vector<1x16x16xf32>
    %cst_21 = arith.constant 0.00392156886 : f32
    %18 = vector.broadcast %cst_21 : f32 to vector<1x16x16xf32>
    %19 = arith.mulf %17, %18 : vector<1x16x16xf32>
    %c0_22 = arith.constant 0 : index
    %c0_23 = arith.constant 0 : index
    %c0_24 = arith.constant 0 : index
    %c0_25 = arith.constant 0 : index
    %20 = vector.load %arg6[%c0_22, %c0_23, %c0_24, %c0_25] : memref<1x4x16x16xf32, #tpu.memory_space<vmem>>, vector<1x1x16x16xf32>
    %21 = vector.shape_cast %20 : vector<1x1x16x16xf32> to vector<1x16x16xf32>
    %22 = vector.shape_cast %19 : vector<1x16x16xf32> to vector<1x1x16x16xf32>
    tpu.vector_store %arg6[%c0_22, %c0_23, %c0_24, %c0_25], %22 {strides = array<i32>} : memref<1x4x16x16xf32, #tpu.memory_space<vmem>>, vector<1x1x16x16xf32>,
    %23 = vector.extract_strided_slice %6 {offsets = [0, 16, 0], sizes = [1, 16, 16], strides = [1, 1, 1]} : vector<1x64x16xf32> to vector<1x16x16xf32>
    %cst_26 = arith.constant dense<0.000000e+00> : vector<1x16x16xf32>
    %24 = tpu.matmul %0, %23, %cst_26 {dimension_numbers = #tpu.dot_dimension_numbers<[2], [1], [1], [2], [0, 0, 0, 1, 1, 2], [0], [0]>} : vector<1x16x16xf32>, vector<1x16x16xf32>, vector<1x16x16xf32> -> vector<1x16x16xf32>
    %25 = math.roundeven %24 : vector<1x16x16xf32>
    %cst_27 = arith.constant 0.00392156886 : f32
    %26 = vector.broadcast %cst_27 : f32 to vector<1x16x16xf32>
    %27 = arith.mulf %25, %26 : vector<1x16x16xf32>
    %c0_28 = arith.constant 0 : index
    %c1 = arith.constant 1 : index
    %c0_29 = arith.constant 0 : index
    %c0_30 = arith.constant 0 : index
    %28 = vector.load %arg5[%c0_28, %c1, %c0_29, %c0_30] : memref<1x4x16x16xf32, #tpu.memory_space<vmem>>, vector<1x1x16x16xf32>
    %29 = vector.shape_cast %28 : vector<1x1x16x16xf32> to vector<1x16x16xf32>
    %30 = vector.shape_cast %27 : vector<1x16x16xf32> to vector<1x1x16x16xf32>
    tpu.vector_store %arg5[%c0_28, %c1, %c0_29, %c0_30], %30 {strides = array<i32>} : memref<1x4x16x16xf32, #tpu.memory_space<vmem>>, vector<1x1x16x16xf32>,
    %31 = vector.extract_strided_slice %7 {offsets = [0, 16, 0], sizes = [1, 16, 16], strides = [1, 1, 1]} : vector<1x64x16xf32> to vector<1x16x16xf32>
    %cst_31 = arith.constant dense<0.000000e+00> : vector<1x16x16xf32>
    %32 = tpu.matmul %0, %31, %cst_31 {dimension_numbers = #tpu.dot_dimension_numbers<[2], [1], [1], [2], [0, 0, 0, 1, 1, 2], [0], [0]>} : vector<1x16x16xf32>, vector<1x16x16xf32>, vector<1x16x16xf32> -> vector<1x16x16xf32>
    %cst_32 = arith.constant 0.00392156886 : f32
    %33 = vector.broadcast %cst_32 : f32 to vector<1x16x16xf32>
    %34 = arith.mulf %32, %33 : vector<1x16x16xf32>
    %c0_33 = arith.constant 0 : index
    %c1_34 = arith.constant 1 : index
    %c0_35 = arith.constant 0 : index
    %c0_36 = arith.constant 0 : index
    %35 = vector.load %arg6[%c0_33, %c1_34, %c0_35, %c0_36] : memref<1x4x16x16xf32, #tpu.memory_space<vmem>>, vector<1x1x16x16xf32>
    %36 = vector.shape_cast %35 : vector<1x1x16x16xf32> to vector<1x16x16xf32>
    %37 = vector.shape_cast %34 : vector<1x16x16xf32> to vector<1x1x16x16xf32>
    tpu.vector_store %arg6[%c0_33, %c1_34, %c0_35, %c0_36], %37 {strides = array<i32>} : memref<1x4x16x16xf32, #tpu.memory_space<vmem>>, vector<1x1x16x16xf32>,
    %38 = vector.extract_strided_slice %6 {offsets = [0, 32, 0], sizes = [1, 16, 16], strides = [1, 1, 1]} : vector<1x64x16xf32> to vector<1x16x16xf32>
    %cst_37 = arith.constant dense<0.000000e+00> : vector<1x16x16xf32>
    %39 = tpu.matmul %0, %38, %cst_37 {dimension_numbers = #tpu.dot_dimension_numbers<[2], [1], [1], [2], [0, 0, 0, 1, 1, 2], [0], [0]>} : vector<1x16x16xf32>, vector<1x16x16xf32>, vector<1x16x16xf32> -> vector<1x16x16xf32>
    %40 = math.roundeven %39 : vector<1x16x16xf32>
    %cst_38 = arith.constant 0.00392156886 : f32
    %41 = vector.broadcast %cst_38 : f32 to vector<1x16x16xf32>
    %42 = arith.mulf %40, %41 : vector<1x16x16xf32>
    %c0_39 = arith.constant 0 : index
    %c2 = arith.constant 2 : index
    %c0_40 = arith.constant 0 : index
    %c0_41 = arith.constant 0 : index
    %43 = vector.load %arg5[%c0_39, %c2, %c0_40, %c0_41] : memref<1x4x16x16xf32, #tpu.memory_space<vmem>>, vector<1x1x16x16xf32>
    %44 = vector.shape_cast %43 : vector<1x1x16x16xf32> to vector<1x16x16xf32>
    %45 = vector.shape_cast %42 : vector<1x16x16xf32> to vector<1x1x16x16xf32>
    tpu.vector_store %arg5[%c0_39, %c2, %c0_40, %c0_41], %45 {strides = array<i32>} : memref<1x4x16x16xf32, #tpu.memory_space<vmem>>, vector<1x1x16x16xf32>,
    %46 = vector.extract_strided_slice %7 {offsets = [0, 32, 0], sizes = [1, 16, 16], strides = [1, 1, 1]} : vector<1x64x16xf32> to vector<1x16x16xf32>
    %cst_42 = arith.constant dense<0.000000e+00> : vector<1x16x16xf32>
    %47 = tpu.matmul %0, %46, %cst_42 {dimension_numbers = #tpu.dot_dimension_numbers<[2], [1], [1], [2], [0, 0, 0, 1, 1, 2], [0], [0]>} : vector<1x16x16xf32>, vector<1x16x16xf32>, vector<1x16x16xf32> -> vector<1x16x16xf32>
    %cst_43 = arith.constant 0.00392156886 : f32
    %48 = vector.broadcast %cst_43 : f32 to vector<1x16x16xf32>
    %49 = arith.mulf %47, %48 : vector<1x16x16xf32>
    %c0_44 = arith.constant 0 : index
    %c2_45 = arith.constant 2 : index
    %c0_46 = arith.constant 0 : index
    %c0_47 = arith.constant 0 : index
    %50 = vector.load %arg6[%c0_44, %c2_45, %c0_46, %c0_47] : memref<1x4x16x16xf32, #tpu.memory_space<vmem>>, vector<1x1x16x16xf32>
    %51 = vector.shape_cast %50 : vector<1x1x16x16xf32> to vector<1x16x16xf32>
    %52 = vector.shape_cast %49 : vector<1x16x16xf32> to vector<1x1x16x16xf32>
    tpu.vector_store %arg6[%c0_44, %c2_45, %c0_46, %c0_47], %52 {strides = array<i32>} : memref<1x4x16x16xf32, #tpu.memory_space<vmem>>, vector<1x1x16x16xf32>,
    %53 = vector.extract_strided_slice %6 {offsets = [0, 48, 0], sizes = [1, 16, 16], strides = [1, 1, 1]} : vector<1x64x16xf32> to vector<1x16x16xf32>
    %cst_48 = arith.constant dense<0.000000e+00> : vector<1x16x16xf32>
    %54 = tpu.matmul %0, %53, %cst_48 {dimension_numbers = #tpu.dot_dimension_numbers<[2], [1], [1], [2], [0, 0, 0, 1, 1, 2], [0], [0]>} : vector<1x16x16xf32>, vector<1x16x16xf32>, vector<1x16x16xf32> -> vector<1x16x16xf32>
    %55 = math.roundeven %54 : vector<1x16x16xf32>
    %cst_49 = arith.constant 0.00392156886 : f32
    %56 = vector.broadcast %cst_49 : f32 to vector<1x16x16xf32>
    %57 = arith.mulf %55, %56 : vector<1x16x16xf32>
    %c0_50 = arith.constant 0 : index
    %c3 = arith.constant 3 : index
    %c0_51 = arith.constant 0 : index
    %c0_52 = arith.constant 0 : index
    %58 = vector.load %arg5[%c0_50, %c3, %c0_51, %c0_52] : memref<1x4x16x16xf32, #tpu.memory_space<vmem>>, vector<1x1x16x16xf32>
    %59 = vector.shape_cast %58 : vector<1x1x16x16xf32> to vector<1x16x16xf32>
    %60 = vector.shape_cast %57 : vector<1x16x16xf32> to vector<1x1x16x16xf32>
    tpu.vector_store %arg5[%c0_50, %c3, %c0_51, %c0_52], %60 {strides = array<i32>} : memref<1x4x16x16xf32, #tpu.memory_space<vmem>>, vector<1x1x16x16xf32>,
    %61 = vector.extract_strided_slice %7 {offsets = [0, 48, 0], sizes = [1, 16, 16], strides = [1, 1, 1]} : vector<1x64x16xf32> to vector<1x16x16xf32>
    %cst_53 = arith.constant dense<0.000000e+00> : vector<1x16x16xf32>
    %62 = tpu.matmul %0, %61, %cst_53 {dimension_numbers = #tpu.dot_dimension_numbers<[2], [1], [1], [2], [0, 0, 0, 1, 1, 2], [0], [0]>} : vector<1x16x16xf32>, vector<1x16x16xf32>, vector<1x16x16xf32> -> vector<1x16x16xf32>
    %cst_54 = arith.constant 0.00392156886 : f32
    %63 = vector.broadcast %cst_54 : f32 to vector<1x16x16xf32>
    %64 = arith.mulf %62, %63 : vector<1x16x16xf32>
    %c0_55 = arith.constant 0 : index
    %c3_56 = arith.constant 3 : index
    %c0_57 = arith.constant 0 : index
    %c0_58 = arith.constant 0 : index
    %65 = vector.load %arg6[%c0_55, %c3_56, %c0_57, %c0_58] : memref<1x4x16x16xf32, #tpu.memory_space<vmem>>, vector<1x1x16x16xf32>
    %66 = vector.shape_cast %65 : vector<1x1x16x16xf32> to vector<1x16x16xf32>
    %67 = vector.shape_cast %64 : vector<1x16x16xf32> to vector<1x1x16x16xf32>
    tpu.vector_store %arg6[%c0_55, %c3_56, %c0_57, %c0_58], %67 {strides = array<i32>} : memref<1x4x16x16xf32, #tpu.memory_space<vmem>>, vector<1x1x16x16xf32>,
    return
  }
  func.func @transform_0(%arg0: i32) -> (i32, i32, i32, i32) {
    %c0_i32 = arith.constant 0 : i32
    %c0_i32_0 = arith.constant 0 : i32
    %c0_i32_1 = arith.constant 0 : i32
    %c0_i32_2 = arith.constant 0 : i32
    return %arg0, %c0_i32, %c0_i32_0, %c0_i32_1 : i32, i32, i32, i32
  }
  func.func @transform_1(%arg0: i32) -> (i32, i32, i32, i32) {
    %c0_i32 = arith.constant 0 : i32
    %c0_i32_0 = arith.constant 0 : i32
    %c0_i32_1 = arith.constant 0 : i32
    %c0_i32_2 = arith.constant 0 : i32
    return %arg0, %c0_i32, %c0_i32_0, %c0_i32_1 : i32, i32, i32, i32
  }
  func.func @transform_2(%arg0: i32) -> (i32, i32, i32) {
    %c0_i32 = arith.constant 0 : i32
    %c0_i32_0 = arith.constant 0 : i32
    %c0_i32_1 = arith.constant 0 : i32
    return %arg0, %c0_i32, %c0_i32_0 : i32, i32, i32
  }
  func.func @transform_3(%arg0: i32) -> (i32, i32, i32) {
    %c0_i32 = arith.constant 0 : i32
    %c0_i32_0 = arith.constant 0 : i32
    %c0_i32_1 = arith.constant 0 : i32
    return %arg0, %c0_i32, %c0_i32_0 : i32, i32, i32
  }
  func.func @transform_4(%arg0: i32) -> (i32, i32, i32, i32) {
    %c0_i32 = arith.constant 0 : i32
    %c0_i32_0 = arith.constant 0 : i32
    %c0_i32_1 = arith.constant 0 : i32
    %c0_i32_2 = arith.constant 0 : i32
    return %arg0, %c0_i32, %c0_i32_0, %c0_i32_1 : i32, i32, i32, i32
  }
  func.func @transform_5(%arg0: i32) -> (i32, i32, i32, i32) {
    %c0_i32 = arith.constant 0 : i32
    %c0_i32_0 = arith.constant 0 : i32
    %c0_i32_1 = arith.constant 0 : i32
    %c0_i32_2 = arith.constant 0 : i32
    return %arg0, %c0_i32, %c0_i32_0, %c0_i32_1 : i32, i32, i32, i32
  }
}

</mosaic_0001>

<bundles_post_ra>
// kernel: tpu_custom_call.1
= control target key start
LH: loop header
LB: loop body
LE: loop exit
PB: predicated region body
PF: predicated region fallthrough
CT: control target
= control target key end

     0   :  { %s1783_s0 = inlined_call_operand.hbm [shape: f32[2,4,16,16], index: 0, kind: input, shape index: {}]   ;;  %s1784_s1 = inlined_call_operand.hbm [shape: f32[2,4,16,16], index: 1, kind: input, shape index: {}]   ;;  %s1785_s2 = inlined_call_operand.hbm [shape: f32[2,16,16], index: 2, kind: input, shape index: {}]   ;;  %s1786_s3 = inlined_call_operand.hbm [shape: f32[2,16,16], index: 3, kind: input, shape index: {}]   ;;  %s1787_s4 = inlined_call_operand.hbm [shape: f32[2,4,16,16], index: 4, kind: output, shape index: {0}]   ;;  %s1788_s5 = inlined_call_operand.hbm [shape: f32[2,4,16,16], index: 5, kind: output, shape index: {1}]  }
   0x1   :  { %1793 = sst [smem:[#allocation20_spill]] %s1783_s0 }
   0x2   :  { %1794 = sst [smem:[#allocation21_spill]] %s1784_s1 }
   0x3   :  { %11 = vsyncpa [#allocation3], 0 }
   0x4   :  { %13 = vsyncpa [#allocation3 + $0x1], 0 }
   0x5   :  { %14 = vsyncpa [#allocation6], 0 }
   0x6   :  { %16 = vsyncpa [#allocation6 + $0x1], 0 }
   0x7   :  { %17 = vsyncpa [#allocation9], 0 }
   0x8   :  { %19 = vsyncpa [#allocation9 + $0x1], 0 }
   0x9   :  { %20 = vsyncpa [#allocation4], 0 }
   0xa   :  { %22 = vsyncpa [#allocation4 + $0x1], 0 }
   0xb   :  { %23 = vsyncpa [#allocation12], 0 }
   0xc   :  { %25 = vsyncpa [#allocation12 + $0x1], 0  ;;  %s1452_s18 = smov 0   ;;  %s1454_s19 = smov 0  }
   0xd   :  { %s1456_s20 = smov 0   ;;  %s1458_s21 = smov 0  }
   0xe LB: > { %1795 = sst [smem:[#allocation18_spill]] %s1412_s20  ;;  %s1473_s22 = sadd.s32 4294967295, %s1416_s21   ;;  %s1416_s21 = sphi %s1458_s21, %s1812_s21   ;;  %s1412_s20 = sphi %s1456_s20, %s1809_s20   ;;  %s1408_s19 = sphi %s1454_s19, %s1811_s19   ;;  %s1404_s18 = sphi %s1452_s18, %s1810_s18  }
   0xf   : > { %s976_s23 = sadd.s32 4294967294, %s1416_s21   ;;  %s1477_s24 = sadd.s32 1, %s1416_s21  }
  0x10   : > { %s38_s25 = sadd.s32 1, %s1412_s20  ;;  %s35_s26 = ssub.s32 %s1416_s21, %s1477_s24 }
  0x11   : > { %p45_p0 = scmp.ne.s32.totalorder %s1412_s20, %s1408_s19  ;;  %p36_p1 = scmp.eq.s32.totalorder %s35_s26, 0 }
  0x12   : > { %p46_p2 = scmp.eq.s32.totalorder %s1416_s21, 0  ;;  %p51_p3 = scmp.ne.s32.totalorder %s1408_s19, %s1404_s18 }
  0x13   : > { %p52_p4 = scmp.eq.s32.totalorder %s1473_s22, 0  ;;  %p153_p7 = scmp.eq.s32.totalorder %s1473_s22, 1 }
  0x14   : > { %s1489_s27 = scalar_select %p36_p1, %s1412_s20, %s38_s25  }
  0x15   : > { %p47_p5 = por %p46_p2, %p45_p0  ;;  %p1491_p6 = por %p52_p4, %p51_p3 }
  0x16   : > { %1796 = sst [smem:[#allocation19_spill]] %s1489_s27  ;;  %p159_p8 = scmp.eq.s32.totalorder %s976_s23, 1 }
  0x17   : > { %p978_p9 = scmp.ge.s32.totalorder %s1416_s21, 2  ;;  %p1152_p10 = scmp.lt.s32.totalorder %s1416_s21, 2 }
  0x18   : > { %p1498_p11 = por %p153_p7, %p45_p0  ;;  %p1502_p12 = por %p159_p8, %p51_p3 }
  0x19   : > { %s1507_s6 = sand.u32 1, %s1412_s20   ;;  %s1050_s7 = sshll.u32 %s1416_s21, 6 }
  0x1a   : > { %s1789_s8 = sshll.u32 %s1507_s6, 6  ;;  %p1511_p13 = pnand %p1152_p10, %p47_p5 }
  0x1b   : > { %s227_s10 = sand.u32 1, %s1416_s21   ;;  %s1801_s1 = sld [smem:[#allocation21_spill]] }
  0x1c   : > { %s231_s14 = scalar_lea.vmem [#allocation5], %s1789_s8  ;;  %p991_p0 = scmp.ge.s32.totalorder %s1416_s21, 1 }
  0x1d   : > { %s239_s15 = sshll.u32 %s231_s14, 4  ;;  %s1524_s17 = scalar_lea.sflag [#allocation6], %s227_s10  ;;  %s240_s15 = int_to_ptr.vmem [resolvable:$true] %s239_s15 }
  0x1e   : > { %p1194_p2 = pneg %p1511_p13 }
  0x21   : > { %s236_s13 = scalar_lea.hbm %s1801_s1, %s1050_s7  ;;  %s1197_s12 = scalar_lea.hbm %s1801_s1, 128 }
  0x22   : > { %s237_s16 = sshll.u32 %s236_s13, 4  ;;  %s238_s16 = int_to_ptr.hbm [resolvable:$true] %s237_s16 }
  0x23   : > { %s1190_s23 = sshra.s32 %s238_s16, 4  ;;  %s1191_s23 = int_to_ptr.hbm [resolvable:$true] %s1190_s23 }
  0x24   : > { %s1192_s25 = scalar_lea.hbm %s1191_s23, 64  ;;  %p1198_p5 = scmp.lt.s32.totalorder %s1191_s23, %s1801_s1 }
  0x25   : > { %p1193_p1 = scmp.ne.s32.totalorder %s1191_s23, %s1192_s25  ;;  %p1199_p7 = scmp.lt.s32.totalorder %s1197_s12, %s1192_s25 }
  0x27   : > { %p1195_p3 = pnand %p1194_p2, %p1193_p1  ;;  %p1200_p8 = por %p1199_p7, %p1198_p5 }
  0x29   : > { %p1196_p4 = pneg %p1195_p3 }
  0x2b   : > { %p1201_p10 = pnand %p1200_p8, %p1196_p4 }
  0x2d   : > { %1204 = shalt.err (!%p1201_p10)
}
  0x2e   : > { %s1791_s10 = smov 128   ;;  %s1419_s8 = smov 8  }
  0x2f   : > { %1138 = dma.hbm_to_vmem [thread:$0]  (!%p1511_p13), %s238_s16, 1024, %s240_s15, %s1524_s17, %s1791_s10, %s1791_s10, %s1419_s8  }
  0x30   : > { %p291_p1 = scmp.lt.s32.totalorder %s1416_s21, 3  ;;  %s1802_s0 = sld [smem:[#allocation20_spill]] }
  0x31   : > { %s1804_s13 = sshll.u32 %s1507_s6, 6  ;;  %s206_s20 = scalar_lea.sflag [#allocation3], %s1507_s6 }
  0x32   : > { %p1551_p3 = pnand %p991_p0, %p291_p1  ;;  %s209_s14 = scalar_lea.vmem [#allocation2], %s1804_s13 }
  0x33   : > { %s217_s1 = sshll.u32 %s209_s14, 4  ;;  %s218_s1 = int_to_ptr.vmem [resolvable:$true] %s217_s1 }
  0x36   : > { %s214_s26 = scalar_lea.hbm %s1802_s0, %s1050_s7  ;;  %s1227_s25 = scalar_lea.hbm %s1802_s0, 128 }
  0x37   : > { %s215_s12 = sshll.u32 %s214_s26, 4  ;;  %s216_s12 = int_to_ptr.hbm [resolvable:$true] %s215_s12 }
  0x38   : > { %s1220_s15 = sshra.s32 %s216_s12, 4  ;;  %s1221_s15 = int_to_ptr.hbm [resolvable:$true] %s1220_s15 }
  0x39   : > { %s1222_s16 = scalar_lea.hbm %s1221_s15, 64  ;;  %p1228_p0 = scmp.lt.s32.totalorder %s1221_s15, %s1802_s0 }
  0x3a   : > { %p1223_p4 = scmp.ne.s32.totalorder %s1221_s15, %s1222_s16  ;;  %p1229_p8 = scmp.lt.s32.totalorder %s1227_s25, %s1222_s16 }
  0x3c   : > { %p1225_p5 = pnand %p1223_p4, %p1194_p2  ;;  %p1230_p10 = por %p1229_p8, %p1228_p0 }
  0x3e   : > { %p1226_p7 = pneg %p1225_p5 }
  0x40   : > { %p1231_p1 = pnand %p1230_p10, %p1226_p7 }
  0x42   : > { %1234 = shalt.err (!%p1231_p1)
}
  0x43   : > { %s1805_s13 = smov 128   ;;  %s1052_s14 = sshll.u32 %s1416_s21, 4 }
  0x44   : > { %1135 = dma.hbm_to_vmem [thread:$0]  (!%p1511_p13), %s216_s12, 1024, %s218_s1, %s206_s20, %s1805_s13, %s1805_s13, %s1419_s8  }
  0x45   : > { %s258_s27 = scalar_lea.hbm %s1785_s2, %s1052_s14  ;;  %s1806_s10 = sshll.u32 %s1507_s6, 4 }
  0x46   : > { %s253_s15 = scalar_lea.vmem [#allocation7], %s1806_s10  ;;  %s259_s25 = sshll.u32 %s258_s27, 4  ;;  %s260_s25 = int_to_ptr.hbm [resolvable:$true] %s259_s25 }
  0x47   : > { %s261_s16 = sshll.u32 %s253_s15, 4  ;;  %s1250_s26 = sshra.s32 %s260_s25, 4  ;;  %s262_s16 = int_to_ptr.vmem [resolvable:$true] %s261_s16  ;;  %s1251_s26 = int_to_ptr.hbm [resolvable:$true] %s1250_s26 }
  0x48   : > { %s1252_s0 = scalar_lea.hbm %s1251_s26, 16  ;;  %s1257_s12 = scalar_lea.hbm %s1785_s2, 32 }
  0x49   : > { %p1253_p4 = scmp.ne.s32.totalorder %s1251_s26, %s1252_s0  ;;  %p1258_p0 = scmp.lt.s32.totalorder %s1251_s26, %s1785_s2 }
  0x4a   : > { %p1259_p8 = scmp.lt.s32.totalorder %s1257_s12, %s1252_s0 }
  0x4b   : > { %p1255_p5 = pnand %p1253_p4, %p1194_p2 }
  0x4c   : > { %p1260_p10 = por %p1259_p8, %p1258_p0 }
  0x4d   : > { %p1256_p7 = pneg %p1255_p5 }
  0x4f   : > { %p1261_p1 = pnand %p1260_p10, %p1256_p7 }
  0x51   : > { %1264 = shalt.err (!%p1261_p1)
}
  0x52   : > { %1141 = dma.hbm_to_vmem [thread:$0]  (!%p1511_p13), %s260_s25, 256, %s262_s16, %s1524_s17, %s1805_s13, %s1805_s13, %s1419_s8  }
  0x53   : > { %s280_s15 = scalar_lea.hbm %s1786_s3, %s1052_s14  ;;  %s1807_s26 = sshll.u32 %s1507_s6, 4 }
  0x54   : > { %s281_s1 = sshll.u32 %s280_s15, 4  ;;  %s275_s0 = scalar_lea.vmem [#allocation8], %s1807_s26  ;;  %s282_s1 = int_to_ptr.hbm [resolvable:$true] %s281_s1 }
  0x55   : > { %s283_s20 = sshll.u32 %s275_s0, 4  ;;  %s272_s12 = scalar_lea.sflag [#allocation9], %s1507_s6  ;;  %s284_s20 = int_to_ptr.vmem [resolvable:$true] %s283_s20 }
  0x56   : > { %s1280_s7 = sshra.s32 %s282_s1, 4  ;;  %s1287_s25 = scalar_lea.hbm %s1786_s3, 32  ;;  %s1281_s7 = int_to_ptr.hbm [resolvable:$true] %s1280_s7 }
  0x57   : > { %s1282_s23 = scalar_lea.hbm %s1281_s7, 16  ;;  %p1288_p0 = scmp.lt.s32.totalorder %s1281_s7, %s1786_s3 }
  0x58   : > { %p1283_p4 = scmp.ne.s32.totalorder %s1281_s7, %s1282_s23  ;;  %p1289_p8 = scmp.lt.s32.totalorder %s1287_s25, %s1282_s23 }
  0x5a   : > { %p1285_p5 = pnand %p1283_p4, %p1194_p2  ;;  %p1290_p10 = por %p1289_p8, %p1288_p0 }
  0x5c   : > { %p1286_p7 = pneg %p1285_p5 }
  0x5e   : > { %p1291_p1 = pnand %p1290_p10, %p1286_p7 }
  0x60   : > { %1294 = shalt.err (!%p1291_p1)
}
  0x61   : > { %1144 = dma.hbm_to_vmem [thread:$0]  (!%p1511_p13), %s282_s1, 256, %s284_s20, %s272_s12, %s1805_s13, %s1805_s13, %s1419_s8  }
  0x62   : > { %295 = sbr.rel (%p1551_p3) target bundleno = 460 (0x1cc), region = 36  ;;  %s1617_s6 = sand.u32 (!%p1551_p3), 1, %s1408_s19  }
  0x63   : > { %s1620_s10 = sshll.u32 (!%p1551_p3), %s1617_s6, 6  ;;  %s298_s15 = scalar_lea.sflag (!%p1551_p3), [#allocation3], %s1617_s6 }
  0x64   : > { %s1624_s26 = scalar_lea.vmem (!%p1551_p3), [#allocation2], %s1620_s10 }
  0x67   : > { %1383 = dma.done.wait (%p1491_p6), %s298_s15, 1024  }
  0x68   : > { %1385 = vsyncadd (%p1491_p6), %s298_s15, 4294966272  ;;  %s307_s8 = sand.u32 1, %s1473_s22   ;;  %s1632_s11 = scalar_lea.vmem [#allocation5], %s1620_s10 }
  0x69   : > { %s308_s9 = scalar_lea.sflag [#allocation6], %s307_s8 }
  0x6a   : > { %1387 = dma.done.wait (%p1491_p6), %s308_s9, 1280  }
  0x6b   : > { %1389 = vsyncadd (%p1491_p6), %s308_s9, 4294966016  ;;  %s994_s13 = sshll.u32 %s1617_s6, 4  ;;  %s328_s0 = scalar_lea.sflag [#allocation9], %s1617_s6 }
  0x6c   : > { %s1639_s1 = scalar_lea.vmem [#allocation7], %s994_s13  ;;  %s331_s20 = scalar_lea.vmem [#allocation8], %s994_s13 }
  0x6d   : > { %1391 = dma.done.wait (%p1491_p6), %s328_s0, 256  }
  0x6e   : > { %1393 = vsyncadd (%p1491_p6), %s328_s0, 4294967040  ;;  %v382_v0 = vld [vmem:[%s331_s20 + $0x8] sm:$0xff]  ;;  %v381_v1 = vld [vmem:[%s331_s20] sm:$0xff]  ;;  %vm399_vm0 = vcmask 130048   ;;  %s1697_s28 = scalar_lea.vmem [#allocation11], %s1620_s10  ;;  %s1702_s12 = scalar_lea.vmem [#allocation10], %s1620_s10 }
  0x6f   : > { %438 = vmatpush.msra.mxu0 %v382_v0  ;;  %503 = vmatpush.msra.mxu1 %v382_v0  ;;  %v383_v2 = vld [vmem:[%s1624_s26] sm:$0xff]  ;;  %v384_v4 = vld [vmem:[%s1624_s26 + $0x8] sm:$0xff]  ;;  %v385_v6 = vld [vmem:[%s1624_s26 + $0x10] sm:$0xff]  ;;  %s1054_s7 = sshll.u32 %s1473_s22, 6  ;;  %s801_s22 = sshll.u32 %s1697_s28, 4  ;;  %s802_s22 = int_to_ptr.vmem [resolvable:$true] %s801_s22 }
  0x70   : > { %v391_v3 = vld [vmem:[%s1632_s11] sm:$0xff]  ;;  %v392_v5 = vld [vmem:[%s1632_s11 + $0x8] sm:$0xff]  ;;  %v393_v7 = vld [vmem:[%s1632_s11 + $0x10] sm:$0xff]  ;;  %s800_s16 = scalar_lea.hbm %s1788_s5, %s1054_s7  ;;  %s783_s10 = scalar_lea.hbm %s1787_s4, %s1054_s7 }
  0x71   : > { %439 = vmatpush.msra.mxu0 %v381_v1  ;;  %504 = vmatpush.msra.mxu1 %v381_v1  ;;  %v386_v8 = vld [vmem:[%s1624_s26 + $0x18] sm:$0xff]  ;;  %v387_v10 = vld [vmem:[%s1624_s26 + $0x20] sm:$0xff]  ;;  %v388_v12 = vld [vmem:[%s1624_s26 + $0x28] sm:$0xff]  ;;  %s803_s25 = sshll.u32 %s800_s16, 4  ;;  %s772_s15 = scalar_lea.sflag [#allocation12], %s1617_s6  ;;  %s804_s25 = int_to_ptr.hbm [resolvable:$true] %s803_s25 }
  0x72   : > { %998 = vmatmul.msk.f32.vlgmr.msra.gmra.mxu0 %vm399_vm0, %v383_v2  ;;  %1006 = vmatmul.msk.f32.vlgmr.msra.gmra.mxu1 %vm399_vm0, %v391_v3  ;;  %v394_v9 = vld [vmem:[%s1632_s11 + $0x18] sm:$0xff]  ;;  %v395_v11 = vld [vmem:[%s1632_s11 + $0x20] sm:$0xff]  ;;  %v396_v13 = vld [vmem:[%s1632_s11 + $0x28] sm:$0xff]  ;;  %s1330_s13 = scalar_lea.hbm %s1788_s5, 128 }
  0x73   : > { %v389_v14 = vld [vmem:[%s1624_s26 + $0x30] sm:$0xff]  ;;  %v390_v16 = vld [vmem:[%s1624_s26 + $0x38] sm:$0xff]  ;;  %s1324_s26 = sshra.s32 %s804_s25, 4  ;;  %s1325_s26 = int_to_ptr.hbm [resolvable:$true] %s1324_s26 }
  0x74   : > { %v397_v15 = vld [vmem:[%s1632_s11 + $0x30] sm:$0xff]  ;;  %v398_v17 = vld [vmem:[%s1632_s11 + $0x38] sm:$0xff]  ;;  %s1326_s8 = scalar_lea.hbm %s1325_s26, 64  ;;  %p1331_p3 = scmp.lt.s32.totalorder %s1325_s26, %s1788_s5 }
  0x75   : > { %v379_v22 = vld [vmem:[%s1639_s1] sm:$0xff]  ;;  %v380_v25 = vld [vmem:[%s1639_s1 + $0x8] sm:$0xff]  ;;  %p1327_p6 = scmp.ne.s32.totalorder %s1325_s26, %s1326_s8  ;;  %p1332_p4 = scmp.lt.s32.totalorder %s1330_s13, %s1326_s8 }
  0x77   : > { %p1328_p13 = pnand %p1327_p6, %p1498_p11  ;;  %p1333_p5 = por %p1332_p4, %p1331_p3 }
  0x79   : > { %p1329_p2 = pneg %p1328_p13 }
  0x7a   : > { %999 = vmatmul.msk.f32.gmra.mxu0 %vm399_vm0, %v384_v4  ;;  %1007 = vmatmul.msk.f32.gmra.mxu1 %vm399_vm0, %v392_v5 }
  0x7b   : > { %p1334_p7 = pnand %p1333_p5, %p1329_p2 }
  0x82   : > { %1000 = vmatmul.msk.f32.gmra.mxu0 %vm399_vm0, %v385_v6  ;;  %1008 = vmatmul.msk.f32.gmra.mxu1 %vm399_vm0, %v393_v7 }
  0x8a   : > { %1001 = vmatmul.msk.f32.gmra.mxu0 %vm399_vm0, %v386_v8  ;;  %1009 = vmatmul.msk.f32.gmra.mxu1 %vm399_vm0, %v394_v9 }
  0x92   : > { %1002 = vmatmul.msk.f32.gmra.mxu0 %vm399_vm0, %v387_v10  ;;  %1010 = vmatmul.msk.f32.gmra.mxu1 %vm399_vm0, %v395_v11 }
  0x9a   : > { %1003 = vmatmul.msk.f32.gmra.mxu0 %vm399_vm0, %v388_v12  ;;  %1011 = vmatmul.msk.f32.gmra.mxu1 %vm399_vm0, %v396_v13 }
  0xa2   : > { %1004 = vmatmul.msk.f32.gmra.mxu0 %vm399_vm0, %v389_v14  ;;  %1012 = vmatmul.msk.f32.gmra.mxu1 %vm399_vm0, %v397_v15 }
  0xaa   : > { %1005 = vmatmul.msk.f32.gmra.mxu0 %vm399_vm0, %v390_v16  ;;  %1013 = vmatmul.msk.f32.gmra.mxu1 %vm399_vm0, %v398_v17 }
  0xef   : > { %v441_v18 = vpop.f32.mrf.mxu0  ;;  %v506_v19 = vpop.f32.mrf.mxu1 }
  0xf7   : > { %v444_v20 = vpop.f32.mrf.mxu0  ;;  %v509_v21 = vpop.f32.mrf.mxu1 }
  0xf8   : > { %550 = vmatpush.msra.mxu2 %v444_v20  ;;  %579 = vmatpush.msra.mxu3 %v509_v21 }
  0xfa   : > { %551 = vmatpush.msra.mxu2 %v441_v18  ;;  %580 = vmatpush.msra.mxu3 %v506_v19 }
  0xfb   : > { %1014 = vmatmul.msk.f32.vlgmr.msra.gmra.mxu2 %vm399_vm0, %v379_v22  ;;  %1016 = vmatmul.msk.f32.vlgmr.msra.gmra.mxu3 %vm399_vm0, %v379_v22 }
  0xff   : > { %v447_v23 = vpop.f32.mrf.mxu0  ;;  %v512_v24 = vpop.f32.mrf.mxu1 }
 0x103   : > { %1015 = vmatmul.msk.f32.gmra.mxu2 %vm399_vm0, %v380_v25  ;;  %1017 = vmatmul.msk.f32.gmra.mxu3 %vm399_vm0, %v380_v25 }
 0x107   : > { %v450_v26 = vpop.f32.mrf.mxu0  ;;  %v515_v27 = vpop.f32.mrf.mxu1 }
 0x108   : > { %606 = vmatpush.msrb.mxu2 %v450_v26  ;;  %636 = vmatpush.msrb.mxu3 %v515_v27 }
 0x10a   : > { %607 = vmatpush.msrb.mxu2 %v447_v23  ;;  %637 = vmatpush.msrb.mxu3 %v512_v24 }
 0x10b   : > { %1018 = vmatmul.msk.f32.vlgmr.msrb.gmra.mxu2 %vm399_vm0, %v379_v22  ;;  %1022 = vmatmul.msk.f32.vlgmr.msrb.gmra.mxu3 %vm399_vm0, %v379_v22 }
 0x10f   : > { %v453_v28 = vpop.f32.mrf.mxu0  ;;  %v518_v29 = vpop.f32.mrf.mxu1 }
 0x113   : > { %1019 = vmatmul.msk.f32.gmra.mxu2 %vm399_vm0, %v380_v25  ;;  %1023 = vmatmul.msk.f32.gmra.mxu3 %vm399_vm0, %v380_v25 }
 0x117   : > { %v456_v30 = vpop.f32.mrf.mxu0  ;;  %v521_v31 = vpop.f32.mrf.mxu1 }
 0x118   : > { %664 = vmatpush.msra.mxu2 %v456_v30  ;;  %694 = vmatpush.msra.mxu3 %v521_v31 }
 0x11a   : > { %665 = vmatpush.msra.mxu2 %v453_v28  ;;  %695 = vmatpush.msra.mxu3 %v518_v29 }
 0x11b   : > { %1026 = vmatmul.msk.f32.vlgmr.msra.gmra.mxu2 %vm399_vm0, %v379_v22  ;;  %1030 = vmatmul.msk.f32.vlgmr.msra.gmra.mxu3 %vm399_vm0, %v379_v22 }
 0x11f   : > { %v459_v32 = vpop.f32.mrf.mxu0  ;;  %v524_v33 = vpop.f32.mrf.mxu1 }
 0x123   : > { %1027 = vmatmul.msk.f32.gmra.mxu2 %vm399_vm0, %v380_v25  ;;  %1031 = vmatmul.msk.f32.gmra.mxu3 %vm399_vm0, %v380_v25 }
 0x127   : > { %v462_v34 = vpop.f32.mrf.mxu0  ;;  %v527_v35 = vpop.f32.mrf.mxu1 }
 0x128   : > { %722 = vmatpush.msrb.mxu2 %v462_v34  ;;  %752 = vmatpush.msrb.mxu3 %v527_v35 }
 0x12a   : > { %723 = vmatpush.msrb.mxu2 %v459_v32  ;;  %753 = vmatpush.msrb.mxu3 %v524_v33 }
 0x12b   : > { %1034 = vmatmul.msk.f32.vlgmr.msrb.gmra.mxu2 %vm399_vm0, %v379_v22  ;;  %1038 = vmatmul.msk.f32.vlgmr.msrb.gmra.mxu3 %vm399_vm0, %v379_v22 }
 0x133   : > { %1035 = vmatmul.msk.f32.gmra.mxu2 %vm399_vm0, %v380_v25  ;;  %1039 = vmatmul.msk.f32.gmra.mxu3 %vm399_vm0, %v380_v25 }
 0x17e   : > { %v553_v36 = vpop.f32.mrf.mxu2  ;;  %v582_v37 = vpop.f32.mrf.mxu3 }
 0x17f   : > { %v1058_v38 = vcvt.f32.s32 %v553_v36  ;;  %v588_v39 = vmul.f32 0.003921569, %v582_v37  ;;  %v1056_v41 = vand.u32 2147483647, %v553_v36  ;;  %v1061_v43 = vand.u32 2147483648, %v553_v36 }
 0x181   : > { %v1059_v40 = vcvt.s32.f32 %v1058_v38  ;;  %590 = vst.msk [vmem:[%s1697_s28] sm:$0xff] %vm399_vm0, %v588_v39  ;;  %vm1057_vm1 = vcmp.lt.f32.partialorder %v1056_v41, 8388608.0 }
 0x183   : > { %v1060_v42 = vand.u32 2147483647, %v1059_v40 }
 0x185   : > { %v1062_v44 = vor.u32 %v1061_v43, %v1060_v42 }
 0x186   : > { %v556_v45 = vpop.f32.mrf.mxu2  ;;  %v585_v46 = vpop.f32.mrf.mxu3 }
 0x187   : > { %v1063_v47 = vsel %vm1057_vm1, %v1062_v44, %v553_v36  ;;  %v1066_v48 = vcvt.f32.s32 %v556_v45  ;;  %v589_v50 = vmul.f32 0.003921569, %v585_v46  ;;  %v1064_v52 = vand.u32 2147483647, %v556_v45 }
 0x188   : > { %v561_v49 = vmul.f32 0.003921569, %v1063_v47  ;;  %v1069_v54 = vand.u32 2147483648, %v556_v45 }
 0x189   : > { %v1067_v51 = vcvt.s32.f32 %v1066_v48  ;;  %591 = vst.msk [vmem:[%s1697_s28 + $0x8] sm:$0xff] %vm399_vm0, %v589_v50  ;;  %vm1065_vm2 = vcmp.lt.f32.partialorder %v1064_v52, 8388608.0 }
 0x18a   : > { %563 = vst.msk [vmem:[%s1702_s12] sm:$0xff] %vm399_vm0, %v561_v49 }
 0x18b   : > { %v1068_v53 = vand.u32 2147483647, %v1067_v51 }
 0x18d   : > { %v1070_v55 = vor.u32 %v1069_v54, %v1068_v53 }
 0x18e   : > { %v609_v56 = vpop.f32.mrf.mxu2  ;;  %v639_v57 = vpop.f32.mrf.mxu3 }
 0x18f   : > { %v1071_v58 = vsel %vm1065_vm2, %v1070_v55, %v556_v45  ;;  %v1074_v59 = vcvt.f32.s32 %v609_v56  ;;  %v645_v61 = vmul.f32 0.003921569, %v639_v57  ;;  %v1072_v63 = vand.u32 2147483647, %v609_v56 }
 0x190   : > { %v562_v60 = vmul.f32 0.003921569, %v1071_v58  ;;  %v1077_v1 = vand.u32 2147483648, %v609_v56 }
 0x191   : > { %v1075_v62 = vcvt.s32.f32 %v1074_v59  ;;  %1024 = vst.msk [vmem:[%s1697_s28 + $0x10] sm:$0xff] %vm399_vm0, %v645_v61  ;;  %vm1073_vm3 = vcmp.lt.f32.partialorder %v1072_v63, 8388608.0 }
 0x192   : > { %564 = vst.msk [vmem:[%s1702_s12 + $0x8] sm:$0xff] %vm399_vm0, %v562_v60 }
 0x193   : > { %v1076_v0 = vand.u32 2147483647, %v1075_v62 }
 0x195   : > { %v1078_v2 = vor.u32 %v1077_v1, %v1076_v0 }
 0x196   : > { %v612_v3 = vpop.f32.mrf.mxu2  ;;  %v642_v4 = vpop.f32.mrf.mxu3 }
 0x197   : > { %v1079_v5 = vsel %vm1073_vm3, %v1078_v2, %v609_v56  ;;  %v1082_v6 = vcvt.f32.s32 %v612_v3  ;;  %v646_v8 = vmul.f32 0.003921569, %v642_v4  ;;  %v1080_v10 = vand.u32 2147483647, %v612_v3 }
 0x198   : > { %v617_v7 = vmul.f32 0.003921569, %v1079_v5  ;;  %v1085_v12 = vand.u32 2147483648, %v612_v3 }
 0x199   : > { %v1083_v9 = vcvt.s32.f32 %v1082_v6  ;;  %1025 = vst.msk [vmem:[%s1697_s28 + $0x18] sm:$0xff] %vm399_vm0, %v646_v8  ;;  %vm1081_vm4 = vcmp.lt.f32.partialorder %v1080_v10, 8388608.0 }
 0x19a   : > { %1020 = vst.msk [vmem:[%s1702_s12 + $0x10] sm:$0xff] %vm399_vm0, %v617_v7 }
 0x19b   : > { %v1084_v11 = vand.u32 2147483647, %v1083_v9 }
 0x19d   : > { %v1086_v13 = vor.u32 %v1085_v12, %v1084_v11 }
 0x19e   : > { %v667_v14 = vpop.f32.mrf.mxu2  ;;  %v697_v15 = vpop.f32.mrf.mxu3 }
 0x19f   : > { %v1087_v16 = vsel %vm1081_vm4, %v1086_v13, %v612_v3  ;;  %v1090_v17 = vcvt.f32.s32 %v667_v14  ;;  %v703_v19 = vmul.f32 0.003921569, %v697_v15  ;;  %v1088_v21 = vand.u32 2147483647, %v667_v14 }
 0x1a0   : > { %v618_v18 = vmul.f32 0.003921569, %v1087_v16  ;;  %v1093_v23 = vand.u32 2147483648, %v667_v14 }
 0x1a1   : > { %v1091_v20 = vcvt.s32.f32 %v1090_v17  ;;  %1032 = vst.msk [vmem:[%s1697_s28 + $0x20] sm:$0xff] %vm399_vm0, %v703_v19  ;;  %vm1089_vm5 = vcmp.lt.f32.partialorder %v1088_v21, 8388608.0 }
 0x1a2   : > { %1021 = vst.msk [vmem:[%s1702_s12 + $0x18] sm:$0xff] %vm399_vm0, %v618_v18 }
 0x1a3   : > { %v1092_v22 = vand.u32 2147483647, %v1091_v20 }
 0x1a5   : > { %v1094_v24 = vor.u32 %v1093_v23, %v1092_v22 }
 0x1a6   : > { %v670_v25 = vpop.f32.mrf.mxu2  ;;  %v700_v26 = vpop.f32.mrf.mxu3 }
 0x1a7   : > { %v1095_v27 = vsel %vm1089_vm5, %v1094_v24, %v667_v14  ;;  %v1098_v28 = vcvt.f32.s32 %v670_v25  ;;  %v704_v30 = vmul.f32 0.003921569, %v700_v26  ;;  %v1096_v32 = vand.u32 2147483647, %v670_v25 }
 0x1a8   : > { %v675_v29 = vmul.f32 0.003921569, %v1095_v27  ;;  %v1101_v34 = vand.u32 2147483648, %v670_v25 }
 0x1a9   : > { %v1099_v31 = vcvt.s32.f32 %v1098_v28  ;;  %1033 = vst.msk [vmem:[%s1697_s28 + $0x28] sm:$0xff] %vm399_vm0, %v704_v30  ;;  %vm1097_vm6 = vcmp.lt.f32.partialorder %v1096_v32, 8388608.0 }
 0x1aa   : > { %1028 = vst.msk [vmem:[%s1702_s12 + $0x20] sm:$0xff] %vm399_vm0, %v675_v29 }
 0x1ab   : > { %v1100_v33 = vand.u32 2147483647, %v1099_v31 }
 0x1ad   : > { %v1102_v35 = vor.u32 %v1101_v34, %v1100_v33 }
 0x1ae   : > { %v725_v36 = vpop.f32.mrf.mxu2  ;;  %v755_v37 = vpop.f32.mrf.mxu3 }
 0x1af   : > { %v1103_v38 = vsel %vm1097_vm6, %v1102_v35, %v670_v25  ;;  %v1106_v39 = vcvt.f32.s32 %v725_v36  ;;  %v761_v41 = vmul.f32 0.003921569, %v755_v37  ;;  %v1104_v43 = vand.u32 2147483647, %v725_v36 }
 0x1b0   : > { %v676_v40 = vmul.f32 0.003921569, %v1103_v38  ;;  %v1109_v45 = vand.u32 2147483648, %v725_v36 }
 0x1b1   : > { %v1107_v42 = vcvt.s32.f32 %v1106_v39  ;;  %1040 = vst.msk [vmem:[%s1697_s28 + $0x30] sm:$0xff] %vm399_vm0, %v761_v41  ;;  %vm1105_vm7 = vcmp.lt.f32.partialorder %v1104_v43, 8388608.0 }
 0x1b2   : > { %1029 = vst.msk [vmem:[%s1702_s12 + $0x28] sm:$0xff] %vm399_vm0, %v676_v40 }
 0x1b3   : > { %v1108_v44 = vand.u32 2147483647, %v1107_v42 }
 0x1b5   : > { %v1110_v46 = vor.u32 %v1109_v45, %v1108_v44 }
 0x1b6   : > { %v728_v47 = vpop.f32.mrf.mxu2  ;;  %v758_v48 = vpop.f32.mrf.mxu3 }
 0x1b7   : > { %v1111_v49 = vsel %vm1105_vm7, %v1110_v46, %v725_v36  ;;  %v1114_v50 = vcvt.f32.s32 %v728_v47  ;;  %v762_v52 = vmul.f32 0.003921569, %v758_v48  ;;  %v1112_v54 = vand.u32 2147483647, %v728_v47 }
 0x1b8   : > { %v733_v51 = vmul.f32 0.003921569, %v1111_v49  ;;  %v1117_v56 = vand.u32 2147483648, %v728_v47 }
 0x1b9   : > { %v1115_v53 = vcvt.s32.f32 %v1114_v50  ;;  %1041 = vst.msk [vmem:[%s1697_s28 + $0x38] sm:$0xff] %vm399_vm0, %v762_v52 }
 0x1ba   : > { %1036 = vst.msk [vmem:[%s1702_s12 + $0x30] sm:$0xff] %vm399_vm0, %v733_v51 }
 0x1bb   : > { %v1116_v55 = vand.u32 2147483647, %v1115_v53 }
 0x1bc   : > { %1337 = shalt.err (!%p1334_p7)
}
 0x1bd   : > { %s1420_s20 = smov 128   ;;  %s1421_s28 = smov 8   ;;  %v1118_v57 = vor.u32 %v1117_v56, %v1116_v55  ;;  %vm1113_vm8 = vcmp.lt.f32.partialorder %v1112_v54, 8388608.0 }
 0x1be   : > { %1129 = dma.vmem_to_hbm [thread:$0]  (%p1498_p11), %s802_s22, 1024, %s804_s25, %s772_s15, %s1420_s20, %s1420_s20, %s1421_s28  }
 0x1bf   : > { %s784_s7 = sshll.u32 %s1702_s12, 4  ;;  %s786_s23 = sshll.u32 %s783_s10, 4  ;;  %v1119_v58 = vsel %vm1113_vm8, %v1118_v57, %v728_v47  ;;  %s785_s7 = int_to_ptr.vmem [resolvable:$true] %s784_s7  ;;  %s787_s23 = int_to_ptr.hbm [resolvable:$true] %s786_s23 }
 0x1c0   : > { %v734_v59 = vmul.f32 0.003921569, %v1119_v58  ;;  %s767_s17 = scalar_lea.sflag [#allocation4], %s1617_s6  ;;  %s1352_s16 = sshra.s32 %s787_s23, 4  ;;  %s1353_s16 = int_to_ptr.hbm [resolvable:$true] %s1352_s16 }
 0x1c1   : > { %s1354_s14 = scalar_lea.hbm %s1353_s16, 64  ;;  %s1358_s25 = scalar_lea.hbm %s1787_s4, 128 }
 0x1c2   : > { %1037 = vst.msk [vmem:[%s1702_s12 + $0x38] sm:$0xff] %vm399_vm0, %v734_v59  ;;  %p1355_p0 = scmp.ne.s32.totalorder %s1353_s16, %s1354_s14  ;;  %p1359_p1 = scmp.lt.s32.totalorder %s1353_s16, %s1787_s4 }
 0x1c3   : > { %p1360_p6 = scmp.lt.s32.totalorder %s1358_s25, %s1354_s14 }
 0x1c4   : > { %p1356_p8 = pnand %p1355_p0, %p1498_p11 }
 0x1c5   : > { %p1361_p13 = por %p1360_p6, %p1359_p1 }
 0x1c6   : > { %p1357_p10 = pneg %p1356_p8 }
 0x1c8   : > { %p1362_p2 = pnand %p1361_p13, %p1357_p10 }
 0x1ca   : > { %1365 = shalt.err (!%p1362_p2)
}
 0x1cb   : > { %1128 = dma.vmem_to_hbm [thread:$0]  (%p1498_p11), %s785_s7, 1024, %s787_s23, %s767_s17, %s1420_s20, %s1420_s20, %s1421_s28  }
 0x1cc PF: > { %s818_s6 = sand.u32 1, %s1404_s18   ;;  %p1146_p3 = pnand %p978_p9, %p1502_p12 }
 0x1cd   : > { %s819_s12 = scalar_lea.sflag [#allocation4], %s818_s6 }
 0x1ce   : > { %p1147_p4 = pneg %p1146_p3 }
 0x1d0   : > { %1395 = dma.done.wait (%p1147_p4), %s819_s12, 1024  }
 0x1d1   : > { %1397 = vsyncadd (%p1147_p4), %s819_s12, 4294966272  ;;  %s829_s26 = scalar_lea.sflag [#allocation12], %s818_s6 }
 0x1d2   : > { %1399 = dma.done.wait (%p1147_p4), %s829_s26, 1024  }
 0x1d3   : > { %1401 = vsyncadd (%p1147_p4), %s829_s26, 4294966272  ;;  %s1808_s8 = sld [smem:[#allocation18_spill]]  ;;  %p28_p11 = scmp.ge.s32.totalorder %s1477_s24, 4  }
 0x1d4   : > { %s1809_s20 = sld [smem:[#allocation19_spill]]  ;;  %s1810_s18 = smov %s1408_s19 }
 0x1d5   : > { %s1812_s21 = smov %s1477_s24  ;;  %30 = sbr.rel (!%p28_p11) target bundleno = 14 (0xe), region = 141 }
 0x1d9   : > { %s1811_s19 = smov %s1808_s8 }
 0x1da   :  { %835 = vsyncpa [#allocation3], 1 }
 0x1db   :  { %837 = vsyncpa [#allocation3 + $0x1], 1 }
 0x1dc   :  { %838 = vsyncpa [#allocation6], 1 }
 0x1dd   :  { %840 = vsyncpa [#allocation6 + $0x1], 1 }
 0x1de   :  { %841 = vsyncpa [#allocation9], 1 }
 0x1df   :  { %843 = vsyncpa [#allocation9 + $0x1], 1 }
 0x1e0   :  { %844 = vsyncpa [#allocation4], 1 }
 0x1e1   :  { %846 = vsyncpa [#allocation4 + $0x1], 1 }
 0x1e2   :  { %847 = vsyncpa [#allocation12], 1 }
 0x1e3   :  { %849 = vsyncpa [#allocation12 + $0x1], 1 }

</bundles_post_ra>
